<compile_context>
chip_gen: v7x
topology: tpu7x:2x2x1
jax: 0.10.0
libtpu: 0.0.40
codegen_flags: <defaults>
</compile_context>

<pallas_src>
import functools

import jax
import jax.numpy as jnp
from jax.experimental import pallas as pl
from jax.experimental.pallas import tpu as pltpu


def _round_down(n, m):
    return (n // m) * m


def _vmem_capacity_bytes():
    try:
        info = pltpu.get_tpu_info()
        cap = getattr(info, "vmem_capacity_bytes", None)
        if cap:
            return int(cap)
    except Exception:
        pass
    return 64 << 20  # conservative default (v7x per-TC VMEM)


# ---------------------------------------------------------------------------
# Kernels
# ---------------------------------------------------------------------------
def _weights_kernel(x_ref, w1t_ref, b1_ref, w_ref):
    """weights = x @ W1^T + b1 (tiny; one MXU pass per batch tile)."""
    w = jnp.dot(x_ref[...], w1t_ref[...], preferred_element_type=jnp.float32)
    w_ref[...] = (w + b1_ref[...]).astype(w_ref.dtype)


def _luts_kernel(w_ref, w2t_ref, luts_ref, *, sub, use_fma):
    """luts tile = weights tile @ w2t tile, processed in column sub-slabs.

    grid = (batch tiles i, lut-column tiles j), both "parallel".
    Sub-slabs keep the f32 intermediates bounded (~2 MiB) instead of
    materializing full-tile temporaries in VMEM.
    """
    w = w_ref[...].astype(jnp.float32)                 # (TB, n_ranks)
    n_ranks = w.shape[1]
    tn = luts_ref.shape[-1]

    col = 0
    while col < tn:                                    # static, unrolled at trace time
        width = min(sub, tn - col)
        w2 = w2t_ref[:, col:col + width].astype(jnp.float32)   # (n_ranks, width)
        if use_fma:
            # n_ranks is tiny (e.g. 3): an MXU contraction would be almost all
            # padding, so do n_ranks broadcast multiply-adds on the VPU instead.
            acc = w[:, 0:1] * w2[0:1, :]
            for r in range(1, n_ranks):
                acc = acc + w[:, r:r + 1] * w2[r:r + 1, :]
        else:
            acc = jnp.dot(w, w2, preferred_element_type=jnp.float32)
        luts_ref[:, col:col + width] = acc.astype(luts_ref.dtype)
        col += width


# ---------------------------------------------------------------------------
# Wrapper
# ---------------------------------------------------------------------------
def prepare_lut_params(w1, b1, w2):
    """One-time parameter prep (hoisted out of the per-call hot path).

    w1: (n_ranks, n_feats), b1: (n_ranks,), w2: (out_dim, n_ranks)  [PyTorch layout]
    Returns (w1t (n_feats, n_ranks), b1 (1, n_ranks), w2t (n_ranks, out_dim)).
    """
    return w1.T, b1.reshape(1, -1), w2.T


@functools.partial(jax.jit, static_argnames=("n_colors", "n_vertices"))
def lut_generator_forward(x, w1t, b1_2d, w2t, *, n_colors, n_vertices):
    """x: (B, n_feats). Returns (weights (B, n_ranks), luts (B, n_colors, V, ..., V))."""
    B, n_feats = x.shape
    n_ranks = w1t.shape[1]
    out_dim = w2t.shape[1]
    itemsize = jnp.dtype(x.dtype).itemsize

    # ---- weights = x @ W1^T + b1 : tiny separate call (keeps the big call's
    # ---- grid free of resident output blocks -> both axes megacore-parallel).
    TBW = B if B <= 1024 else 1024
    weights = pl.pallas_call(
        _weights_kernel,
        out_shape=jax.ShapeDtypeStruct((B, n_ranks), x.dtype),
        grid_spec=pltpu.PrefetchScalarGridSpec(
            num_scalar_prefetch=0,
            grid=(pl.cdiv(B, TBW),),
            in_specs=[
                pl.BlockSpec((TBW, n_feats), lambda i: (i, 0)),
                pl.BlockSpec((n_feats, n_ranks), lambda i: (0, 0)),
                pl.BlockSpec((1, n_ranks), lambda i: (0, 0)),
            ],
            out_specs=pl.BlockSpec((TBW, n_ranks), lambda i: (i, 0)),
        ),
        compiler_params=pltpu.CompilerParams(
            dimension_semantics=("parallel",)),
    )(x, w1t, b1_2d)

    # ---- luts = weights @ W2^T : dominant, HBM-bandwidth bound. ----
    TB = B if B <= 512 else 512

    vmem_cap = _vmem_capacity_bytes()
    budget = max(32 << 20, vmem_cap * 7 // 10)      # ~45 MiB v7x, ~90 MiB v5e/v6e
    slack = 8 << 20                                 # slab temps / compiler scratch headroom
    tn_cap = max(128, _round_down((budget - slack) // (2 * (TB + n_ranks) * itemsize), 128))

    TN_TARGET = 16384
    if out_dim <= min(tn_cap, 2 * TN_TARGET):
        TN = out_dim                                # single column tile (full dim)
    else:
        TN = min(tn_cap, TN_TARGET)                 # multiple of 128; ragged tail is masked

    # Column sub-slab width: keep per-slab f32 temporaries around ~2 MiB.
    sub = min(TN, max(512, _round_down((2 << 20) // (4 * TB), 128)))
    use_fma = n_ranks <= 8
    kernel = functools.partial(_luts_kernel, sub=sub, use_fma=use_fma)

    cost = pl.CostEstimate(
        flops=2 * B * n_ranks * out_dim,
        transcendentals=0,
        bytes_accessed=itemsize * (B * n_ranks + n_ranks * out_dim + B * out_dim),
    )

    luts2d = pl.pallas_call(
        kernel,
        out_shape=jax.ShapeDtypeStruct((B, out_dim), x.dtype),
        grid_spec=pltpu.PrefetchScalarGridSpec(
            num_scalar_prefetch=0,
            grid=(pl.cdiv(B, TB), pl.cdiv(out_dim, TN)),
            in_specs=[
                pl.BlockSpec((TB, n_ranks), lambda i, j: (i, 0)),
                pl.BlockSpec((n_ranks, TN), lambda i, j: (0, j)),
            ],
            out_specs=pl.BlockSpec((TB, TN), lambda i, j: (i, j)),
        ),
        compiler_params=pltpu.CompilerParams(
            dimension_semantics=("parallel", "parallel"),
            vmem_limit_bytes=int(budget),
        ),
        cost_estimate=cost,
    )(weights, w2t)

    # Contiguous (free) reshape: out_shape was exact, no de-pad copy needed.
    luts = luts2d.reshape((B, n_colors) + (n_vertices,) * n_colors)
    return weights, luts


# ---------------------------------------------------------------------------
# Parameter init (mirrors LUTGenerator.__init__ + init_weights) and reference
# ---------------------------------------------------------------------------
def init_params(n_colors, n_vertices, n_feats, n_ranks, key):
    k1, _ = jax.random.split(key)
    bound = 1.0 / jnp.sqrt(jnp.float32(n_feats))
    w1 = jax.random.uniform(k1, (n_ranks, n_feats), jnp.float32, -bound, bound)
    b1 = jnp.ones((n_ranks,), jnp.float32)

    grids = jnp.meshgrid(*[jnp.arange(n_vertices, dtype=jnp.float32)
                           for _ in range(n_colors)], indexing="ij")
    identity = jnp.stack(grids, axis=0) / (n_vertices - 1)       # (C, V, ..., V)
    identity = jnp.flip(identity, axis=0)
    zeros = jnp.zeros((n_ranks - 1, n_colors) + (n_vertices,) * n_colors, jnp.float32)
    basis = jnp.concatenate([identity[None], zeros], axis=0).reshape(n_ranks, -1)
    w2 = basis.T                                                  # (out_dim, n_ranks)
    return w1, b1, w2


def reference_forward(x, w1, b1, w2, n_colors, n_vertices):
    weights = x @ w1.T + b1
    luts = weights @ w2.T
    luts = luts.reshape((x.shape[0], -1) + (n_vertices,) * n_colors)
    return weights, luts


# TODO(synk): regularizations() (training-time smoothness/monotonicity loss) is not
# part of forward() and is not implemented here.


# ---------------------------------------------------------------------------
# Self-test
# ---------------------------------------------------------------------------
def _run_case(n_colors, n_vertices, n_feats, n_ranks, batch, key):
    kx, kp = jax.random.split(key)
    x = jax.random.normal(kx, (batch, n_feats), jnp.float32)
    w1, b1, w2 = init_params(n_colors, n_vertices, n_feats, n_ranks, kp)
    w1t, b1_2d, w2t = prepare_lut_params(w1, b1, w2)   # one-time prep, outside hot path

    weights, luts = lut_generator_forward(
        x, w1t, b1_2d, w2t, n_colors=n_colors, n_vertices=n_vertices)
    jax.block_until_ready((weights, luts))

    ref_w, ref_l = reference_forward(x, w1, b1, w2, n_colors, n_vertices)
    assert weights.shape == (batch, n_ranks)
    assert luts.shape == (batch, n_colors) + (n_vertices,) * n_colors
    assert jnp.allclose(weights, ref_w, atol=1e-5, rtol=1e-5)
    assert jnp.allclose(luts, ref_l, atol=1e-5, rtol=1e-5)


if __name__ == "__main__":
    root = jax.random.PRNGKey(0)
    k0, k1, k2 = jax.random.split(root, 3)
    # Small RGB LUT: 8 vertices/dim, 32-dim feature vector (out_dim = 1536, one tile).
    _run_case(n_colors=3, n_vertices=8, n_feats=32, n_ranks=3, batch=2, key=k0)
    # 17-vertex LUT (out_dim = 14739, not 128-aligned): single ragged-width tile.
    _run_case(n_colors=3, n_vertices=17, n_feats=32, n_ranks=3, batch=4, key=k1)
    # 33-vertex LUT (out_dim = 107811): multiple 16384-wide column tiles with a
    # ragged masked tail -> exercises the no-padding writeback path.
    _run_case(n_colors=3, n_vertices=33, n_feats=32, n_ranks=3, batch=2, key=k2)

    print("KERNEL_OK")
</pallas_src>

<mosaic_0001>
module attributes {stable_mosaic.version = 11 : i64} {
  func.func @_luts_kernel(%arg0: i32, %arg1: i32, %arg2: memref<2x3xf32, #tpu.memory_space<vmem>>, %arg3: memref<3x1536xf32, #tpu.memory_space<vmem>>, %arg4: memref<2x1536xf32, #tpu.memory_space<vmem>>) attributes {dimension_semantics = [#tpu.dimension_semantics<parallel>, #tpu.dimension_semantics<parallel>], iteration_bounds = array<i64: 1, 1>, scalar_prefetch = 0 : i64, scratch_operands = 0 : i64, tpu.core_type = #tpu.core_type<tc>, window_params = [{transform_indices = @transform_0, window_bounds = array<i64: 2, 3>}, {transform_indices = @transform_1, window_bounds = array<i64: 3, 1536>}, {transform_indices = @transform_2, window_bounds = array<i64: 2, 1536>}]} {
    %c0 = arith.constant 0 : index
    %c0_0 = arith.constant 0 : index
    %0 = vector.load %arg2[%c0, %c0_0] : memref<2x3xf32, #tpu.memory_space<vmem>>, vector<2x3xf32>
    %c0_1 = arith.constant 0 : index
    %c0_2 = arith.constant 0 : index
    %1 = vector.load %arg3[%c0_1, %c0_2] : memref<3x1536xf32, #tpu.memory_space<vmem>>, vector<3x1536xf32>
    %2 = vector.extract_strided_slice %0 {offsets = [0, 0], sizes = [2, 1], strides = [1, 1]} : vector<2x3xf32> to vector<2x1xf32>
    %3 = vector.extract_strided_slice %1 {offsets = [0, 0], sizes = [1, 1536], strides = [1, 1]} : vector<3x1536xf32> to vector<1x1536xf32>
    %4 = vector.broadcast %2 : vector<2x1xf32> to vector<2x1536xf32>
    %5 = vector.broadcast %3 : vector<1x1536xf32> to vector<2x1536xf32>
    %6 = arith.mulf %4, %5 : vector<2x1536xf32>
    %7 = vector.extract_strided_slice %0 {offsets = [0, 1], sizes = [2, 1], strides = [1, 1]} : vector<2x3xf32> to vector<2x1xf32>
    %8 = vector.extract_strided_slice %1 {offsets = [1, 0], sizes = [1, 1536], strides = [1, 1]} : vector<3x1536xf32> to vector<1x1536xf32>
    %9 = vector.broadcast %7 : vector<2x1xf32> to vector<2x1536xf32>
    %10 = vector.broadcast %8 : vector<1x1536xf32> to vector<2x1536xf32>
    %11 = arith.mulf %9, %10 : vector<2x1536xf32>
    %12 = arith.addf %6, %11 : vector<2x1536xf32>
    %13 = vector.extract_strided_slice %0 {offsets = [0, 2], sizes = [2, 1], strides = [1, 1]} : vector<2x3xf32> to vector<2x1xf32>
    %14 = vector.extract_strided_slice %1 {offsets = [2, 0], sizes = [1, 1536], strides = [1, 1]} : vector<3x1536xf32> to vector<1x1536xf32>
    %15 = vector.broadcast %13 : vector<2x1xf32> to vector<2x1536xf32>
    %16 = vector.broadcast %14 : vector<1x1536xf32> to vector<2x1536xf32>
    %17 = arith.mulf %15, %16 : vector<2x1536xf32>
    %18 = arith.addf %12, %17 : vector<2x1536xf32>
    %c0_3 = arith.constant 0 : index
    %c0_4 = arith.constant 0 : index
    %19 = vector.load %arg4[%c0_3, %c0_4] : memref<2x1536xf32, #tpu.memory_space<vmem>>, vector<2x1536xf32>
    tpu.vector_store %arg4[%c0_3, %c0_4], %18 {strides = array<i32>} : memref<2x1536xf32, #tpu.memory_space<vmem>>, vector<2x1536xf32>,
    return
  }
  func.func @transform_0(%arg0: i32, %arg1: i32) -> (i32, i32) {
    %c0_i32 = arith.constant 0 : i32
    %c0_i32_0 = arith.constant 0 : i32
    return %arg0, %c0_i32 : i32, i32
  }
  func.func @transform_1(%arg0: i32, %arg1: i32) -> (i32, i32) {
    %c0_i32 = arith.constant 0 : i32
    %c0_i32_0 = arith.constant 0 : i32
    return %c0_i32, %arg1 : i32, i32
  }
  func.func @transform_2(%arg0: i32, %arg1: i32) -> (i32, i32) {
    %c0_i32 = arith.constant 0 : i32
    return %arg0, %arg1 : i32, i32
  }
}

module attributes {stable_mosaic.version = 11 : i64} {
  func.func @_weights_kernel(%arg0: i32, %arg1: memref<2x32xf32, #tpu.memory_space<vmem>>, %arg2: memref<32x3xf32, #tpu.memory_space<vmem>>, %arg3: memref<1x3xf32, #tpu.memory_space<vmem>>, %arg4: memref<2x3xf32, #tpu.memory_space<vmem>>) attributes {dimension_semantics = [#tpu.dimension_semantics<parallel>], iteration_bounds = array<i64: 1>, scalar_prefetch = 0 : i64, scratch_operands = 0 : i64, tpu.core_type = #tpu.core_type<tc>, window_params = [{transform_indices = @transform_0, window_bounds = array<i64: 2, 32>}, {pipeline_mode = #tpu.pipeline_mode<synchronous>, transform_indices = @transform_1, window_bounds = array<i64: 32, 3>}, {pipeline_mode = #tpu.pipeline_mode<synchronous>, transform_indices = @transform_2, window_bounds = array<i64: 1, 3>}, {transform_indices = @transform_3, window_bounds = array<i64: 2, 3>}]} {
    %c0 = arith.constant 0 : index
    %c0_0 = arith.constant 0 : index
    %0 = vector.load %arg1[%c0, %c0_0] : memref<2x32xf32, #tpu.memory_space<vmem>>, vector<2x32xf32>
    %c0_1 = arith.constant 0 : index
    %c0_2 = arith.constant 0 : index
    %1 = vector.load %arg2[%c0_1, %c0_2] : memref<32x3xf32, #tpu.memory_space<vmem>>, vector<32x3xf32>
    %cst = arith.constant dense<0.000000e+00> : vector<2x3xf32>
    %2 = tpu.matmul %0, %1, %cst {dimension_numbers = #tpu.dot_dimension_numbers<[1], [0], [0], [1], [0, 0, 1, 1], [], []>} : vector<2x32xf32>, vector<32x3xf32>, vector<2x3xf32> -> vector<2x3xf32>
    %c0_3 = arith.constant 0 : index
    %c0_4 = arith.constant 0 : index
    %3 = vector.load %arg3[%c0_3, %c0_4] : memref<1x3xf32, #tpu.memory_space<vmem>>, vector<1x3xf32>
    %4 = vector.broadcast %3 : vector<1x3xf32> to vector<2x3xf32>
    %5 = arith.addf %2, %4 : vector<2x3xf32>
    %c0_5 = arith.constant 0 : index
    %c0_6 = arith.constant 0 : index
    %6 = vector.load %arg4[%c0_5, %c0_6] : memref<2x3xf32, #tpu.memory_space<vmem>>, vector<2x3xf32>
    tpu.vector_store %arg4[%c0_5, %c0_6], %5 {strides = array<i32>} : memref<2x3xf32, #tpu.memory_space<vmem>>, vector<2x3xf32>,
    return
  }
  func.func @transform_0(%arg0: i32) -> (i32, i32) {
    %c0_i32 = arith.constant 0 : i32
    %c0_i32_0 = arith.constant 0 : i32
    return %arg0, %c0_i32 : i32, i32
  }
  func.func @transform_1(%arg0: i32) -> (i32, i32) {
    %c0_i32 = arith.constant 0 : i32
    %c0_i32_0 = arith.constant 0 : i32
    %c0_i32_1 = arith.constant 0 : i32
    return %c0_i32, %c0_i32_0 : i32, i32
  }
  func.func @transform_2(%arg0: i32) -> (i32, i32) {
    %c0_i32 = arith.constant 0 : i32
    %c0_i32_0 = arith.constant 0 : i32
    %c0_i32_1 = arith.constant 0 : i32
    return %c0_i32, %c0_i32_0 : i32, i32
  }
  func.func @transform_3(%arg0: i32) -> (i32, i32) {
    %c0_i32 = arith.constant 0 : i32
    %c0_i32_0 = arith.constant 0 : i32
    return %arg0, %c0_i32 : i32, i32
  }
}

</mosaic_0001>

<bundles_post_ra>
// kernel: lut_generator_forward.2
= control target key start
LH: loop header
LB: loop body
LE: loop exit
PB: predicated region body
PF: predicated region fallthrough
CT: control target
= control target key end

     0   :  { %8 = vsyncpa [#allocation3], 0  ;;  %s273_s0 = inlined_call_operand.hbm [shape: f32[2,32], index: 0, kind: input, shape index: {}]   ;;  %s274_s1 = inlined_call_operand.vmem [shape: f32[32,3], index: 1, kind: input, shape index: {}]   ;;  %s275_s2 = inlined_call_operand.hbm [shape: f32[1,3], index: 2, kind: input, shape index: {}]   ;;  %s276_s3 = inlined_call_operand.vmem [shape: f32[2,3], index: 3, kind: output, shape index: {}]  }
   0x1   :  { %9 = vsyncpa [#allocation5], 0  ;;  %s209_s12 = smov [#allocation2]   ;;  %s210_s14 = smov [#allocation4]  }
   0x2   :  { %s16_s13 = sshll.u32 %s209_s12, 4  ;;  %s28_s15 = sshll.u32 %s210_s14, 4  ;;  %s17_s13 = int_to_ptr.vmem [resolvable:$true] %s16_s13  ;;  %s29_s15 = int_to_ptr.vmem [resolvable:$true] %s28_s15 }
   0x3   :  { %s161_s18 = scalar_lea.hbm %s273_s0, 32 }
   0x4   :  { %p162_p0 = scmp.ne.s32.totalorder %s273_s0, %s161_s18  ;;  %p165_p1 = scmp.lt.u32.totalorder %s161_s18, %s273_s0 }
   0x6   :  { %p167_p2 = pnand %p165_p1, %p162_p0 }
   0x8   :  { %170 = shalt.err (!%p167_p2)
}
   0x9   :  { %s171_s23 = scalar_lea.vmem %s17_s13, 32  ;;  %p176_p4 = scmp.lt.s32.totalorder %s17_s13, %s17_s13 }
   0xa   :  { %p172_p3 = scmp.ne.s32.totalorder %s17_s13, %s171_s23  ;;  %p177_p5 = scmp.lt.s32.totalorder %s171_s23, %s171_s23 }
   0xc   :  { %p178_p6 = por %p177_p5, %p176_p4 }
   0xe   :  { %p179_p7 = pnand %p178_p6, %p172_p3 }
  0x10   :  { %182 = shalt.err (!%p179_p7)
}
  0x11   :  { %19 = dma.hbm_to_vmem [thread:$0]  %s273_s0, 32, %s17_s13, [#allocation3]  }
  0x12   :  { %s183_s28 = scalar_lea.hbm %s275_s2, 16 }
  0x13   :  { %p184_p8 = scmp.ne.s32.totalorder %s275_s2, %s183_s28  ;;  %p187_p9 = scmp.lt.u32.totalorder %s183_s28, %s275_s2 }
  0x15   :  { %p189_p10 = pnand %p187_p9, %p184_p8 }
  0x17   :  { %192 = shalt.err (!%p189_p10)
}
  0x18   :  { %s193_s6 = scalar_lea.vmem %s29_s15, 16  ;;  %s197_s7 = scalar_lea.vmem %s29_s15, 32 }
  0x19   :  { %p194_p11 = scmp.ne.s32.totalorder %s29_s15, %s193_s6  ;;  %p198_p12 = scmp.lt.s32.totalorder %s29_s15, %s29_s15 }
  0x1a   :  { %p199_p13 = scmp.lt.s32.totalorder %s197_s7, %s193_s6 }
  0x1c   :  { %p200_p0 = por %p199_p13, %p198_p12 }
  0x1e   :  { %p201_p1 = pnand %p200_p0, %p194_p11 }
  0x20   :  { %204 = shalt.err (!%p201_p1)
}
  0x21   :  { %31 = dma.hbm_to_vmem [thread:$0]  %s275_s2, 16, %s29_s15, [#allocation5]  }
  0x22   :  { %205 = dma.done.wait [#allocation3], 32  }
  0x23   :  { %206 = vsyncadd [#allocation3], 4294967264 }
  0x24   :  { %207 = dma.done.wait [#allocation5], 16  }
  0x25   :  { %208 = vsyncadd [#allocation5], 4294967280  ;;  %v211_v0 = vmov 0.0|0.0   ;;  %vm212_vm0 = vmmov 0   ;;  %v213_v1 = vmov 0.0   ;;  %v39_v2 = vld [vmem:[%s274_s1] sm:$0xff] }
  0x26   :  { %150 = vmatprep.subr.bf16.mxu0 %v211_v0  ;;  %147 = vmatprep.mubr.msk.f32.mxu0 %vm212_vm0, %v213_v1  ;;  %v40_v3 = vld [vmem:[%s274_s1 + $0x8] sm:$0xff]  ;;  %v41_v4 = vld [vmem:[%s274_s1 + $0x10] sm:$0xff]  ;;  %v42_v6 = vld [vmem:[%s274_s1 + $0x18] sm:$0xff]  ;;  %vm50_vm1 = vcmask 261120   ;;  %vm124_vm2 = vcmask 17408  }
  0x27   :  { %v151_v5 = vpack.c.bf16 %v40_v3, %v39_v2  ;;  %v154_v7 = vpack.c.bf16 %v42_v6, %v41_v4  ;;  %v38_v8 = vld [vmem:[#allocation2] sm:$0x3]  ;;  %v132_v9 = vld [vmem:[#allocation4] ss:$0 sm:$0xff] }
  0x29   :  { %152 = vmatpush3.bf16.msra.mxu0 %v151_v5 }
  0x2a   :  { %153 = vmatprep.subr.bf16.mxu0 %v211_v0 }
  0x2d   :  { %155 = vmatpush3.bf16.msra.mxu0 %v154_v7 }
  0x30   :  { %148 = vmatmul.mubr.msk.f32.vlgmr.msra.gmra.mrb[0].mxu0 %vm50_vm1, %v38_v8 }
 0x103   :  { %v120_v10 = vpop.f32.mrb[0].mxu0 }
 0x104   :  { %v121_v11 = vadd.f32 %v132_v9, %v120_v10  ;;  %v149_v12 = vpop.f32.mrb[1].mxu0 }
 0x106   :  { %125 = vst.msk [vmem:[%s276_s3] sm:$0x3] %vm124_vm2, %v121_v11 }
 0x107   :  { %130 = vsyncpa [#allocation3], 1 }
 0x108   :  { %131 = vsyncpa [#allocation5], 1 }

// kernel: lut_generator_forward.3
= control target key start
LH: loop header
LB: loop body
LE: loop exit
PB: predicated region body
PF: predicated region fallthrough
CT: control target
= control target key end

     0   :  { %v502_v0 = vmov 0   ;;  %v503_v2 = vmov 2   ;;  %v504_v3 = vmov 1   ;;  %v29_v4 = vlaneseq  ;;  %s692_s0 = inlined_call_operand.vmem [shape: f32[2,3], index: 0, kind: input, shape index: {}]   ;;  %s693_s1 = inlined_call_operand.vmem [shape: f32[3,1536], index: 1, kind: input, shape index: {}]   ;;  %s694_s2 = inlined_call_operand.vmem [shape: f32[2,1536], index: 2, kind: output, shape index: {}]  }
   0x1   :  { %498 = vset.pattern.permute.xlu0 %v502_v0  ;;  %v11_v1 = vld [vmem:[%s692_s0] sm:$0x3]  ;;  %500 = vset.pattern.permute.xlu1 %v503_v2  ;;  %v536_v9 = vld [vmem:[%s693_s1 + $0x8] sm:$0x77]  ;;  %v541_v10 = vld [vmem:[%s693_s1 + $0x10] sm:$0x77] }
   0x2   :  { %20 = vperm.xlu0 %498, %v11_v1   ;;  %286 = vperm.xlu1 %500, %v11_v1   ;;  %v524_v5 = vshrl.u32 %v29_v4, 7  ;;  %v531_v8 = vld [vmem:[%s693_s1] sm:$0x77]  ;;  %v546_v11 = vld [vmem:[%s693_s1 + $0x18] sm:$0x77] }
   0x3   :  { %v551_v12 = vld [vmem:[%s693_s1 + $0x20] sm:$0x77]  ;;  %v556_v13 = vld [vmem:[%s693_s1 + $0x28] sm:$0x77]  ;;  %v505_v60 = vmov 1983009808  }
   0x4   :  { %v31_v6 = vsub.s32 0, %v524_v5  ;;  %v35_v7 = vsub.s32 4, %v524_v5  ;;  %v155_v23 = vsub.s32 1, %v524_v5  ;;  %v159_v24 = vsub.s32 5, %v524_v5 }
   0x5   :  { %v570_v25 = vsub.s32 2, %v524_v5  ;;  %v576_v29 = vsub.s32 6, %v524_v5  ;;  %v436_v61 = vunpack.c.l.s4 %v505_v60 }
   0x6   :  { %499 = vset.pattern.permute.xlu0 %v504_v3  ;;  %v32_v14 = vrot.slane %v531_v8, %v31_v6  ;;  %v36_v15 = vrot.slane %v531_v8, %v35_v7  ;;  %v40_v16 = vrot.slane %v536_v9, %v31_v6  ;;  %v44_v17 = vrot.slane %v536_v9, %v35_v7 }
   0x7   :  { %150 = vperm.xlu0 %499, %v11_v1   ;;  %v48_v18 = vrot.slane %v541_v10, %v31_v6  ;;  %v52_v19 = vrot.slane %v541_v10, %v35_v7  ;;  %v56_v20 = vrot.slane %v546_v11, %v31_v6  ;;  %v60_v21 = vrot.slane %v546_v11, %v35_v7 }
   0x8   :  { %v64_v22 = vrot.slane %v551_v12, %v31_v6  ;;  %v68_v26 = vrot.slane %v551_v12, %v35_v7  ;;  %v72_v27 = vrot.slane %v556_v13, %v31_v6  ;;  %v76_v28 = vrot.slane %v556_v13, %v35_v7 }
   0x9   :  { %v578_v30 = vrot.slane %v32_v14, %v31_v6  ;;  %v580_v31 = vrot.slane %v36_v15, %v31_v6  ;;  %v582_v32 = vrot.slane %v40_v16, %v31_v6  ;;  %v584_v33 = vrot.slane %v44_v17, %v31_v6 }
   0xa   :  { %v586_v34 = vrot.slane %v48_v18, %v31_v6  ;;  %v588_v35 = vrot.slane %v52_v19, %v31_v6  ;;  %v590_v36 = vrot.slane %v56_v20, %v31_v6  ;;  %v592_v37 = vrot.slane %v60_v21, %v31_v6 }
   0xb   :  { %501 = vset.pattern.permute.xlu0 %v503_v2  ;;  %v594_v38 = vrot.slane %v64_v22, %v31_v6  ;;  %v156_v39 = vrot.slane %v531_v8, %v155_v23  ;;  %v160_v40 = vrot.slane %v531_v8, %v159_v24  ;;  %v164_v41 = vrot.slane %v536_v9, %v155_v23 }
   0xc   :  { %v599_v42 = vrot.slane %v68_v26, %v31_v6  ;;  %v168_v43 = vrot.slane %v536_v9, %v159_v24  ;;  %v172_v44 = vrot.slane %v541_v10, %v155_v23  ;;  %v176_v45 = vrot.slane %v541_v10, %v159_v24 }
   0xd   :  { %v180_v46 = vrot.slane %v546_v11, %v155_v23  ;;  %v184_v47 = vrot.slane %v546_v11, %v159_v24  ;;  %v188_v48 = vrot.slane %v551_v12, %v155_v23  ;;  %v132_v49 = vrot.slane %v72_v27, %v31_v6 }
   0xe   :  { %v136_v50 = vrot.slane %v76_v28, %v31_v6  ;;  %v192_v51 = vrot.slane %v551_v12, %v159_v24  ;;  %v196_v52 = vrot.slane %v556_v13, %v155_v23  ;;  %v200_v53 = vrot.slane %v556_v13, %v159_v24 }
   0xf   :  { %v610_v54 = vrot.slane %v156_v39, %v155_v23  ;;  %v612_v55 = vrot.slane %v160_v40, %v155_v23  ;;  %v614_v56 = vrot.slane %v164_v41, %v155_v23  ;;  %v616_v57 = vrot.slane %v168_v43, %v155_v23 }
  0x10   :  { %v618_v58 = vrot.slane %v172_v44, %v155_v23  ;;  %v620_v59 = vrot.slane %v176_v45, %v155_v23  ;;  %v240_v62 = vrot.slane %v180_v46, %v155_v23  ;;  %v244_v63 = vrot.slane %v184_v47, %v155_v23 }
  0x11   :  { %v248_v0 = vrot.slane %v188_v48, %v155_v23  ;;  %v292_v1 = vrot.slane %v531_v8, %v570_v25  ;;  %v296_v2 = vrot.slane %v531_v8, %v576_v29  ;;  %v300_v3 = vrot.slane %v536_v9, %v570_v25 }
  0x12   :  { %v304_v4 = vrot.slane %v536_v9, %v576_v29  ;;  %v308_v6 = vrot.slane %v541_v10, %v570_v25  ;;  %v312_v7 = vrot.slane %v541_v10, %v576_v29  ;;  %v316_v14 = vrot.slane %v546_v11, %v570_v25 }
  0x13   :  { %v320_v15 = vrot.slane %v546_v11, %v576_v29  ;;  %v324_v8 = vrot.slane %v551_v12, %v570_v25  ;;  %v328_v16 = vrot.slane %v551_v12, %v576_v29  ;;  %v332_v9 = vrot.slane %v556_v13, %v570_v25 }
  0x14   :  { %v336_v17 = vrot.slane %v556_v13, %v576_v29  ;;  %v437_v18 = vunpack.c.0.s8 %v436_v61  ;;  %v252_v10 = vrot.slane %v192_v51, %v155_v23  ;;  %v256_v19 = vrot.slane %v196_v52, %v155_v23 }
  0x15   :  { %v260_v20 = vrot.slane %v200_v53, %v155_v23  ;;  %v352_v21 = vrot.slane %v292_v1, %v570_v25  ;;  %v356_v11 = vrot.slane %v296_v2, %v570_v25  ;;  %v360_v22 = vrot.slane %v300_v3, %v570_v25 }
  0x16   :  { %v364_v24 = vrot.slane %v304_v4, %v570_v25  ;;  %v368_v12 = vrot.slane %v308_v6, %v570_v25  ;;  %v372_v26 = vrot.slane %v312_v7, %v570_v25  ;;  %v376_v27 = vrot.slane %v316_v14, %v570_v25 }
  0x17   :  { %v380_v13 = vrot.slane %v320_v15, %v570_v25  ;;  %v384_v28 = vrot.slane %v324_v8, %v570_v25  ;;  %v388_v23 = vrot.slane %v328_v16, %v570_v25  ;;  %v392_v39 = vrot.slane %v332_v9, %v570_v25 }
  0x18   :  { %v396_v40 = vrot.slane %v336_v17, %v570_v25  ;;  %v659_v41 = vsub.s32 %v437_v18, %v524_v5 }
  0x81   :  { %v21_v29 = vpop.permute.xlu0 %20  ;;  %v287_v47 = vpop.permute.xlu1 %286 }
  0x82   :  { %v137_v43 = vmul.f32 %v578_v30, %v21_v29  ;;  %v138_v44 = vmul.f32 %v580_v31, %v21_v29  ;;  %v139_v45 = vmul.f32 %v582_v32, %v21_v29  ;;  %v140_v46 = vmul.f32 %v584_v33, %v21_v29 }
  0x83   :  { %v141_v48 = vmul.f32 %v586_v34, %v21_v29  ;;  %v142_v51 = vmul.f32 %v588_v35, %v21_v29  ;;  %v143_v52 = vmul.f32 %v590_v36, %v21_v29  ;;  %v144_v25 = vmul.f32 %v592_v37, %v21_v29 }
  0x84   :  { %v145_v5 = vmul.f32 %v594_v38, %v21_v29  ;;  %v146_v53 = vmul.f32 %v599_v42, %v21_v29  ;;  %v147_v30 = vmul.f32 %v132_v49, %v21_v29  ;;  %v148_v60 = vmul.f32 %v136_v50, %v21_v29 }
  0x85   :  { %v397_v31 = vmul.f32 %v352_v21, %v287_v47  ;;  %v398_v61 = vmul.f32 %v356_v11, %v287_v47  ;;  %v399_v32 = vmul.f32 %v360_v22, %v287_v47  ;;  %v400_v1 = vmul.f32 %v364_v24, %v287_v47 }
  0x86   :  { %v151_v33 = vpop.permute.xlu0 %150  ;;  %v401_v2 = vmul.f32 %v368_v12, %v287_v47  ;;  %v402_v3 = vmul.f32 %v372_v26, %v287_v47  ;;  %v403_v34 = vmul.f32 %v376_v27, %v287_v47  ;;  %v404_v4 = vmul.f32 %v380_v13, %v287_v47 }
  0x87   :  { %v261_v35 = vmul.f32 %v610_v54, %v151_v33  ;;  %v262_v36 = vmul.f32 %v612_v55, %v151_v33  ;;  %v263_v37 = vmul.f32 %v614_v56, %v151_v33  ;;  %v264_v38 = vmul.f32 %v616_v57, %v151_v33 }
  0x88   :  { %v265_v42 = vmul.f32 %v618_v58, %v151_v33  ;;  %v266_v49 = vmul.f32 %v620_v59, %v151_v33  ;;  %v267_v50 = vmul.f32 %v240_v62, %v151_v33  ;;  %v268_v6 = vmul.f32 %v244_v63, %v151_v33 }
  0x89   :  { %v269_v7 = vmul.f32 %v248_v0, %v151_v33  ;;  %v270_v14 = vmul.f32 %v252_v10, %v151_v33  ;;  %v271_v15 = vmul.f32 %v256_v19, %v151_v33  ;;  %v272_v8 = vmul.f32 %v260_v20, %v151_v33 }
  0x8a   :  { %v273_v16 = vadd.f32 %v261_v35, %v137_v43  ;;  %v274_v9 = vadd.f32 %v262_v36, %v138_v44  ;;  %v275_v17 = vadd.f32 %v263_v37, %v139_v45  ;;  %v276_v54 = vadd.f32 %v264_v38, %v140_v46 }
  0x8b   :  { %v277_v18 = vadd.f32 %v265_v42, %v141_v48  ;;  %v278_v55 = vadd.f32 %v266_v49, %v142_v51  ;;  %v279_v21 = vadd.f32 %v267_v50, %v143_v52  ;;  %v280_v56 = vadd.f32 %v268_v6, %v144_v25 }
  0x8c   :  { %v281_v11 = vadd.f32 %v269_v7, %v145_v5  ;;  %v282_v57 = vadd.f32 %v270_v14, %v146_v53  ;;  %v283_v22 = vadd.f32 %v271_v15, %v147_v30  ;;  %v284_v58 = vadd.f32 %v272_v8, %v148_v60 }
  0x8d   :  { %v405_v24 = vmul.f32 %v384_v28, %v287_v47  ;;  %v406_v59 = vmul.f32 %v388_v23, %v287_v47  ;;  %v407_v62 = vmul.f32 %v392_v39, %v287_v47  ;;  %v408_v63 = vmul.f32 %v396_v40, %v287_v47 }
  0x8e   :  { %v409_v0 = vadd.f32 %v397_v31, %v273_v16  ;;  %v410_v10 = vadd.f32 %v398_v61, %v274_v9  ;;  %v411_v19 = vadd.f32 %v399_v32, %v275_v17  ;;  %v412_v20 = vadd.f32 %v400_v1, %v276_v54 }
  0x8f   :  { %v413_v12 = vadd.f32 %v401_v2, %v277_v18  ;;  %v414_v26 = vadd.f32 %v402_v3, %v278_v55  ;;  %v415_v27 = vadd.f32 %v403_v34, %v279_v21  ;;  %v416_v13 = vadd.f32 %v404_v4, %v280_v56 }
  0x90   :  { %v417_v29 = vadd.f32 %v405_v24, %v281_v11  ;;  %v418_v43 = vadd.f32 %v406_v59, %v282_v57  ;;  %v419_v44 = vadd.f32 %v407_v62, %v283_v22  ;;  %v420_v45 = vadd.f32 %v408_v63, %v284_v58 }
  0x91   :  { %v433_v46 = vcombine.low %v409_v0, %v410_v10  ;;  %v434_v48 = vcombine.low %v411_v19, %v412_v20  ;;  %v450_v51 = vcombine.low %v413_v12, %v414_v26  ;;  %v451_v52 = vcombine.low %v415_v27, %v416_v13 }
  0x92   :  { %v467_v28 = vcombine.low %v417_v29, %v418_v43  ;;  %v468_v23 = vcombine.low %v419_v44, %v420_v45 }
  0x93   :  { %v441_v39 = vrot.slane %v433_v46, %v659_v41  ;;  %v448_v40 = vrot.slane %v434_v48, %v659_v41  ;;  %v458_v47 = vrot.slane %v450_v51, %v659_v41  ;;  %v465_v25 = vrot.slane %v451_v52, %v659_v41 }
  0x94   :  { %v475_v5 = vrot.slane %v467_v28, %v659_v41  ;;  %v482_v53 = vrot.slane %v468_v23, %v659_v41 }
  0x95   :  { %v449_v30 = vcombine.low %v441_v39, %v448_v40  ;;  %v466_v60 = vcombine.low %v458_v47, %v465_v25 }
  0x96   :  { %v483_v31 = vcombine.low %v475_v5, %v482_v53 }
  0x97   :  { %487 = vst [vmem:[%s694_s2] sm:$0xff] %v449_v30  ;;  %488 = vst [vmem:[%s694_s2 + $0x8] sm:$0xff] %v466_v60 }
  0x98   :  { %489 = vst [vmem:[%s694_s2 + $0x10] sm:$0xff] %v483_v31 }

</bundles_post_ra>
